<compile_context>
chip_gen: v7x
topology: tpu7x:2x2x1
jax: 0.10.0
libtpu: 0.0.40
codegen_flags: <defaults>
</compile_context>

<pallas_src>
import jax
import jax.numpy as jnp
from jax.experimental import pallas as pl
from jax.experimental.pallas import tpu as pltpu


# ----------------------------- Pallas kernel ------------------------------ #

def _discriminator_kernel(x_ref,
                          w0_ref, b0_ref,
                          w1_ref, b1_ref,
                          w2_ref, b2_ref,
                          w3_ref, b3_ref,
                          w4_ref, b4_ref,
                          out_ref):
    """Fused 5-layer MLP: 4x (bf16-MXU Linear + f32 LeakyReLU(0.2)) + lane-dense out."""

    def block(h_bf16, w_ref, b_ref):
        z = jnp.dot(h_bf16, w_ref[...],
                    preferred_element_type=jnp.float32) + b_ref[...]
        return jnp.maximum(z, 0.2 * z)            # LeakyReLU(0.2), single VALU max

    h = block(x_ref[...], w0_ref, b0_ref)                    # input_layer + leakyRelu0
    h = block(h.astype(jnp.bfloat16), w1_ref, b1_ref)         # hidden (SN Linear + Dropout(id) + LReLU)
    h = block(h.astype(jnp.bfloat16), w2_ref, b2_ref)         # last_hid_layer_1
    h = block(h.astype(jnp.bfloat16), w3_ref, b3_ref)         # last_hid_layer

    # output_layer: out_features == 1.  Contract the f32 weight row (1, H)
    # against h's feature dim to produce a lane-dense (1, tile) result (batch
    # rows on the lane dim) -> one unmasked store row instead of `tile` 1-lane
    # masked stores and a strided writeback.
    out = jax.lax.dot_general(
        w4_ref[...], h,
        dimension_numbers=(((1,), (1,)), ((), ())),
        preferred_element_type=jnp.float32) + b4_ref[...]
    out_ref[...] = out.astype(out_ref.dtype)


def _round_up(x, m):
    return (x + m - 1) // m * m


def _cdiv(a, b):
    return (a + b - 1) // b


def discriminator_forward(disc_input, params, *, batch_tile=256):
    """disc_input: [B, output_dim + x_dim]; params: list of (Wt [in,out], b [1,out])."""
    B, in_dim = disc_input.shape
    n_layers = len(params)

    # --- batch-derived tiling.
    #   * tile comes from the batch (padding <= 15 rows per step), not the
    #     batch from a fixed tile.
    #   * small batches run as a single grid step (grid = sequential loop on
    #     1-TC v5e/v6e; on v7x a tiny half-step is below per-step overhead).
    #   * large batches split into an even number of "parallel" steps so v7x
    #     megacore sharding stays balanced.
    G = 16                                   # row granule (bf16 sublane packing)
    Bg = _round_up(B, G)
    n_steps = max(1, _cdiv(Bg, batch_tile))
    if n_steps > 1:
        n_steps = _round_up(n_steps, 2)
    tile = _round_up(_cdiv(Bg, n_steps), G)
    B_pad = n_steps * tile

    x = disc_input.astype(jnp.bfloat16)
    if B_pad != B:
        x = jnp.pad(x, ((0, B_pad - B), (0, 0)))

    # --- operands: bf16 weights for the four MXU layers; the final N=1 layer's
    #     weight is passed as an f32 row [1, H].  Weight / bias BlockSpecs use a
    #     constant index_map -> resident across grid steps.
    flat = []
    in_specs = [pl.BlockSpec((tile, in_dim), lambda i: (i, 0))]
    for li, (wt, b) in enumerate(params):
        if li < n_layers - 1:
            w_arg = wt.astype(jnp.bfloat16)
        else:
            w_arg = wt.reshape(1, -1).astype(jnp.float32)
        b_arg = b.astype(jnp.float32)
        flat.extend([w_arg, b_arg])
        in_specs.append(pl.BlockSpec(w_arg.shape, lambda i: (0, 0)))
        in_specs.append(pl.BlockSpec(b_arg.shape, lambda i: (0, 0)))

    out_dim = params[-1][0].shape[1]          # == 1

    # --- advisory cost estimate for XLA's scheduler.
    dims = [in_dim] + [wt.shape[1] for wt, _ in params]
    flops = 2 * B_pad * sum(a * b for a, b in zip(dims[:-1], dims[1:]))
    weight_bytes = sum(
        int(wt.size) * (2 if li < n_layers - 1 else 4) + int(b.size) * 4
        for li, (wt, b) in enumerate(params))
    cost = pl.CostEstimate(
        flops=int(flops),
        transcendentals=0,
        bytes_accessed=int(B_pad * in_dim * 2 + B_pad * out_dim * 4 + weight_bytes))

    # Lane-dense output slab: (n_steps, 1, tile) f32; each grid step writes one
    # (1, tile) row with batch rows on the lane dim.
    out = pl.pallas_call(
        _discriminator_kernel,
        out_shape=jax.ShapeDtypeStruct((n_steps, 1, tile), jnp.float32),
        grid_spec=pltpu.PrefetchScalarGridSpec(
            num_scalar_prefetch=0,
            grid=(n_steps,),
            in_specs=in_specs,
            out_specs=pl.BlockSpec((None, 1, tile), lambda i: (i, 0, 0)),
        ),
        compiler_params=pltpu.CompilerParams(
            dimension_semantics=("parallel",)),
        cost_estimate=cost,
    )(x, *flat)

    validity = out.reshape(B_pad, 1)
    return validity[:B] if B_pad != B else validity


# --------------------------- parameter setup (glue) ------------------------ #

def _init_linear(key, in_feat, out_feat):
    """PyTorch-style Linear init (uniform +/- 1/sqrt(in)), W is (out, in)."""
    kw, kb = jax.random.split(key)
    bound = 1.0 / jnp.sqrt(jnp.float32(in_feat))
    w = jax.random.uniform(kw, (out_feat, in_feat), jnp.float32, -bound, bound)
    b = jax.random.uniform(kb, (out_feat,), jnp.float32, -bound, bound)
    return w, b


def _spectral_normalize(w, key, n_power_iterations=1, eps=1e-12):
    """nn.utils.spectral_norm semantics: divide W (out,in) by estimated sigma."""
    out_feat = w.shape[0]
    u = jax.random.normal(key, (out_feat,), jnp.float32)
    u = u / (jnp.linalg.norm(u) + eps)
    v = None
    for _ in range(n_power_iterations):
        v = w.T @ u
        v = v / (jnp.linalg.norm(v) + eps)
        u = w @ v
        u = u / (jnp.linalg.norm(u) + eps)
    sigma = u @ (w @ v)
    return w / sigma


def build_discriminator_params(key, output_dim, x_dim, first_layer_node_num,
                               hid_2_node_num, hid_3_node_num, hidden_last_node):
    """Returns list of (W^T [in,out], bias [1,out]) for the 5 linear layers."""
    keys = jax.random.split(key, 10)
    layers = []

    # input_layer (no spectral norm)
    w, b = _init_linear(keys[0], output_dim + x_dim, first_layer_node_num)
    layers.append((w.T, b[None, :]))

    # hidden: SN(Linear(first -> hid2))
    w, b = _init_linear(keys[1], first_layer_node_num, hid_2_node_num)
    w = _spectral_normalize(w, keys[2])
    layers.append((w.T, b[None, :]))

    # last_hid_layer_1: SN(Linear(hid2 -> hid3))
    w, b = _init_linear(keys[3], hid_2_node_num, hid_3_node_num)
    w = _spectral_normalize(w, keys[4])
    layers.append((w.T, b[None, :]))

    # last_hid_layer: SN(Linear(hid3 -> hidden_last))
    w, b = _init_linear(keys[5], hid_3_node_num, hidden_last_node)
    w = _spectral_normalize(w, keys[6])
    layers.append((w.T, b[None, :]))

    # output_layer: SN(Linear(hidden_last -> 1))
    w, b = _init_linear(keys[7], hidden_last_node, 1)
    w = _spectral_normalize(w, keys[8])
    layers.append((w.T, b[None, :]))

    return layers


# ------------------------------ references --------------------------------- #

def reference_forward_f32(disc_input, params):
    """Pure-JAX f32 reference (matches the PyTorch module math)."""
    h = disc_input
    n = len(params)
    for i, (wt, b) in enumerate(params):
        h = h @ wt + b
        if i < n - 1:
            h = jnp.where(h > 0, h, 0.2 * h)
    return h


def reference_forward_mixed(disc_input, params):
    """Reference matching the kernel's bf16-MXU / f32-accumulate numerics."""
    h = disc_input.astype(jnp.bfloat16)
    z = None
    for (wt, b) in params[:-1]:
        z = jnp.dot(h, wt.astype(jnp.bfloat16),
                    preferred_element_type=jnp.float32) + b
        z = jnp.maximum(z, 0.2 * z)
        h = z.astype(jnp.bfloat16)
    wt, b = params[-1]
    return z @ wt.astype(jnp.float32) + b


# ---------------------------------- main ----------------------------------- #

if __name__ == "__main__":
    # Module hyper-parameters (hid_layer_num=3 path, self_attention=0).
    output_dim = 4
    x_dim = 4
    first_layer_node_num = 32
    hid_2_node_num = 32
    hid_3_node_num = 32
    hidden_last_node = 32
    batch = 64   # small -> single grid step (no forced megacore split)

    root = jax.random.PRNGKey(0)
    k_params, k_y, k_x = jax.random.split(root, 3)

    params = build_discriminator_params(
        k_params, output_dim, x_dim, first_layer_node_num,
        hid_2_node_num, hid_3_node_num, hidden_last_node)

    y_norm = jax.random.normal(k_y, (batch, output_dim), jnp.float32)
    x_input = jax.random.normal(k_x, (batch, x_dim), jnp.float32)

    # torch.cat((x_input, y_norm), -1)
    disc_input = jnp.concatenate([x_input, y_norm], axis=-1)

    validity = discriminator_forward(disc_input, params)
    validity = jax.block_until_ready(validity)
    assert validity.shape == (batch, 1)

    ref_mixed = reference_forward_mixed(disc_input, params)
    ref_f32 = reference_forward_f32(disc_input, params)
    assert jnp.allclose(validity, ref_mixed, atol=1e-3, rtol=1e-2), \
        "mismatch vs mixed-precision JAX reference"
    assert jnp.allclose(validity, ref_f32, atol=2e-2, rtol=5e-2), \
        "mismatch vs f32 JAX reference"

    print("KERNEL_OK")
</pallas_src>

<mosaic_0001>
module attributes {stable_mosaic.version = 11 : i64} {
  func.func @_discriminator_kernel(%arg0: i32, %arg1: memref<64x8xbf16, #tpu.memory_space<vmem>>, %arg2: memref<8x32xbf16, #tpu.memory_space<vmem>>, %arg3: memref<1x32xf32, #tpu.memory_space<vmem>>, %arg4: memref<32x32xbf16, #tpu.memory_space<vmem>>, %arg5: memref<1x32xf32, #tpu.memory_space<vmem>>, %arg6: memref<32x32xbf16, #tpu.memory_space<vmem>>, %arg7: memref<1x32xf32, #tpu.memory_space<vmem>>, %arg8: memref<32x32xbf16, #tpu.memory_space<vmem>>, %arg9: memref<1x32xf32, #tpu.memory_space<vmem>>, %arg10: memref<1x32xf32, #tpu.memory_space<vmem>>, %arg11: memref<1x1xf32, #tpu.memory_space<vmem>>, %arg12: memref<1x1x64xf32, #tpu.memory_space<vmem>>) attributes {dimension_semantics = [#tpu.dimension_semantics<parallel>], iteration_bounds = array<i64: 1>, scalar_prefetch = 0 : i64, scratch_operands = 0 : i64, tpu.core_type = #tpu.core_type<tc>, window_params = [{transform_indices = @transform_0, window_bounds = array<i64: 64, 8>}, {pipeline_mode = #tpu.pipeline_mode<synchronous>, transform_indices = @transform_1, window_bounds = array<i64: 8, 32>}, {pipeline_mode = #tpu.pipeline_mode<synchronous>, transform_indices = @transform_2, window_bounds = array<i64: 1, 32>}, {pipeline_mode = #tpu.pipeline_mode<synchronous>, transform_indices = @transform_3, window_bounds = array<i64: 32, 32>}, {pipeline_mode = #tpu.pipeline_mode<synchronous>, transform_indices = @transform_4, window_bounds = array<i64: 1, 32>}, {pipeline_mode = #tpu.pipeline_mode<synchronous>, transform_indices = @transform_5, window_bounds = array<i64: 32, 32>}, {pipeline_mode = #tpu.pipeline_mode<synchronous>, transform_indices = @transform_6, window_bounds = array<i64: 1, 32>}, {pipeline_mode = #tpu.pipeline_mode<synchronous>, transform_indices = @transform_7, window_bounds = array<i64: 32, 32>}, {pipeline_mode = #tpu.pipeline_mode<synchronous>, transform_indices = @transform_8, window_bounds = array<i64: 1, 32>}, {pipeline_mode = #tpu.pipeline_mode<synchronous>, transform_indices = @transform_9, window_bounds = array<i64: 1, 32>}, {pipeline_mode = #tpu.pipeline_mode<synchronous>, transform_indices = @transform_10, window_bounds = array<i64: 1, 1>}, {transform_indices = @transform_11, window_bounds = array<i64: 1, 1, 64>}]} {
    %c0 = arith.constant 0 : index
    %c0_0 = arith.constant 0 : index
    %0 = vector.load %arg1[%c0, %c0_0] : memref<64x8xbf16, #tpu.memory_space<vmem>>, vector<64x8xbf16>
    %c0_1 = arith.constant 0 : index
    %c0_2 = arith.constant 0 : index
    %1 = vector.load %arg2[%c0_1, %c0_2] : memref<8x32xbf16, #tpu.memory_space<vmem>>, vector<8x32xbf16>
    %cst = arith.constant dense<0.000000e+00> : vector<64x32xf32>
    %2 = tpu.matmul %0, %1, %cst {dimension_numbers = #tpu.dot_dimension_numbers<[1], [0], [0], [1], [0, 0, 1, 1], [], []>} : vector<64x8xbf16>, vector<8x32xbf16>, vector<64x32xf32> -> vector<64x32xf32>
    %c0_3 = arith.constant 0 : index
    %c0_4 = arith.constant 0 : index
    %3 = vector.load %arg3[%c0_3, %c0_4] : memref<1x32xf32, #tpu.memory_space<vmem>>, vector<1x32xf32>
    %4 = vector.broadcast %3 : vector<1x32xf32> to vector<64x32xf32>
    %5 = arith.addf %2, %4 : vector<64x32xf32>
    %cst_5 = arith.constant 2.000000e-01 : f32
    %6 = vector.broadcast %cst_5 : f32 to vector<64x32xf32>
    %7 = arith.mulf %6, %5 : vector<64x32xf32>
    %8 = arith.maximumf %5, %7 : vector<64x32xf32>
    %9 = arith.truncf %8 : vector<64x32xf32> to vector<64x32xbf16>
    %c0_6 = arith.constant 0 : index
    %c0_7 = arith.constant 0 : index
    %10 = vector.load %arg4[%c0_6, %c0_7] : memref<32x32xbf16, #tpu.memory_space<vmem>>, vector<32x32xbf16>
    %cst_8 = arith.constant dense<0.000000e+00> : vector<64x32xf32>
    %11 = tpu.matmul %9, %10, %cst_8 {dimension_numbers = #tpu.dot_dimension_numbers<[1], [0], [0], [1], [0, 0, 1, 1], [], []>} : vector<64x32xbf16>, vector<32x32xbf16>, vector<64x32xf32> -> vector<64x32xf32>
    %c0_9 = arith.constant 0 : index
    %c0_10 = arith.constant 0 : index
    %12 = vector.load %arg5[%c0_9, %c0_10] : memref<1x32xf32, #tpu.memory_space<vmem>>, vector<1x32xf32>
    %13 = vector.broadcast %12 : vector<1x32xf32> to vector<64x32xf32>
    %14 = arith.addf %11, %13 : vector<64x32xf32>
    %cst_11 = arith.constant 2.000000e-01 : f32
    %15 = vector.broadcast %cst_11 : f32 to vector<64x32xf32>
    %16 = arith.mulf %15, %14 : vector<64x32xf32>
    %17 = arith.maximumf %14, %16 : vector<64x32xf32>
    %18 = arith.truncf %17 : vector<64x32xf32> to vector<64x32xbf16>
    %c0_12 = arith.constant 0 : index
    %c0_13 = arith.constant 0 : index
    %19 = vector.load %arg6[%c0_12, %c0_13] : memref<32x32xbf16, #tpu.memory_space<vmem>>, vector<32x32xbf16>
    %cst_14 = arith.constant dense<0.000000e+00> : vector<64x32xf32>
    %20 = tpu.matmul %18, %19, %cst_14 {dimension_numbers = #tpu.dot_dimension_numbers<[1], [0], [0], [1], [0, 0, 1, 1], [], []>} : vector<64x32xbf16>, vector<32x32xbf16>, vector<64x32xf32> -> vector<64x32xf32>
    %c0_15 = arith.constant 0 : index
    %c0_16 = arith.constant 0 : index
    %21 = vector.load %arg7[%c0_15, %c0_16] : memref<1x32xf32, #tpu.memory_space<vmem>>, vector<1x32xf32>
    %22 = vector.broadcast %21 : vector<1x32xf32> to vector<64x32xf32>
    %23 = arith.addf %20, %22 : vector<64x32xf32>
    %cst_17 = arith.constant 2.000000e-01 : f32
    %24 = vector.broadcast %cst_17 : f32 to vector<64x32xf32>
    %25 = arith.mulf %24, %23 : vector<64x32xf32>
    %26 = arith.maximumf %23, %25 : vector<64x32xf32>
    %27 = arith.truncf %26 : vector<64x32xf32> to vector<64x32xbf16>
    %c0_18 = arith.constant 0 : index
    %c0_19 = arith.constant 0 : index
    %28 = vector.load %arg8[%c0_18, %c0_19] : memref<32x32xbf16, #tpu.memory_space<vmem>>, vector<32x32xbf16>
    %cst_20 = arith.constant dense<0.000000e+00> : vector<64x32xf32>
    %29 = tpu.matmul %27, %28, %cst_20 {dimension_numbers = #tpu.dot_dimension_numbers<[1], [0], [0], [1], [0, 0, 1, 1], [], []>} : vector<64x32xbf16>, vector<32x32xbf16>, vector<64x32xf32> -> vector<64x32xf32>
    %c0_21 = arith.constant 0 : index
    %c0_22 = arith.constant 0 : index
    %30 = vector.load %arg9[%c0_21, %c0_22] : memref<1x32xf32, #tpu.memory_space<vmem>>, vector<1x32xf32>
    %31 = vector.broadcast %30 : vector<1x32xf32> to vector<64x32xf32>
    %32 = arith.addf %29, %31 : vector<64x32xf32>
    %cst_23 = arith.constant 2.000000e-01 : f32
    %33 = vector.broadcast %cst_23 : f32 to vector<64x32xf32>
    %34 = arith.mulf %33, %32 : vector<64x32xf32>
    %35 = arith.maximumf %32, %34 : vector<64x32xf32>
    %c0_24 = arith.constant 0 : index
    %c0_25 = arith.constant 0 : index
    %36 = vector.load %arg10[%c0_24, %c0_25] : memref<1x32xf32, #tpu.memory_space<vmem>>, vector<1x32xf32>
    %cst_26 = arith.constant dense<0.000000e+00> : vector<1x64xf32>
    %37 = tpu.matmul %36, %35, %cst_26 {dimension_numbers = #tpu.dot_dimension_numbers<[1], [1], [0], [0], [0, 0, 1, 0], [], []>} : vector<1x32xf32>, vector<64x32xf32>, vector<1x64xf32> -> vector<1x64xf32>
    %c0_27 = arith.constant 0 : index
    %c0_28 = arith.constant 0 : index
    %38 = vector.load %arg11[%c0_27, %c0_28] : memref<1x1xf32, #tpu.memory_space<vmem>>, vector<1x1xf32>
    %39 = vector.broadcast %38 : vector<1x1xf32> to vector<1x64xf32>
    %40 = arith.addf %37, %39 : vector<1x64xf32>
    %c0_29 = arith.constant 0 : index
    %c0_30 = arith.constant 0 : index
    %c0_31 = arith.constant 0 : index
    %41 = vector.load %arg12[%c0_29, %c0_30, %c0_31] : memref<1x1x64xf32, #tpu.memory_space<vmem>>, vector<1x1x64xf32>
    %42 = vector.shape_cast %41 : vector<1x1x64xf32> to vector<1x64xf32>
    %43 = vector.shape_cast %40 : vector<1x64xf32> to vector<1x1x64xf32>
    tpu.vector_store %arg12[%c0_29, %c0_30, %c0_31], %43 {strides = array<i32>} : memref<1x1x64xf32, #tpu.memory_space<vmem>>, vector<1x1x64xf32>,
    return
  }
  func.func @transform_0(%arg0: i32) -> (i32, i32) {
    %c0_i32 = arith.constant 0 : i32
    %c0_i32_0 = arith.constant 0 : i32
    return %arg0, %c0_i32 : i32, i32
  }
  func.func @transform_1(%arg0: i32) -> (i32, i32) {
    %c0_i32 = arith.constant 0 : i32
    %c0_i32_0 = arith.constant 0 : i32
    %c0_i32_1 = arith.constant 0 : i32
    return %c0_i32, %c0_i32_0 : i32, i32
  }
  func.func @transform_2(%arg0: i32) -> (i32, i32) {
    %c0_i32 = arith.constant 0 : i32
    %c0_i32_0 = arith.constant 0 : i32
    %c0_i32_1 = arith.constant 0 : i32
    return %c0_i32, %c0_i32_0 : i32, i32
  }
  func.func @transform_3(%arg0: i32) -> (i32, i32) {
    %c0_i32 = arith.constant 0 : i32
    %c0_i32_0 = arith.constant 0 : i32
    %c0_i32_1 = arith.constant 0 : i32
    return %c0_i32, %c0_i32_0 : i32, i32
  }
  func.func @transform_4(%arg0: i32) -> (i32, i32) {
    %c0_i32 = arith.constant 0 : i32
    %c0_i32_0 = arith.constant 0 : i32
    %c0_i32_1 = arith.constant 0 : i32
    return %c0_i32, %c0_i32_0 : i32, i32
  }
  func.func @transform_5(%arg0: i32) -> (i32, i32) {
    %c0_i32 = arith.constant 0 : i32
    %c0_i32_0 = arith.constant 0 : i32
    %c0_i32_1 = arith.constant 0 : i32
    return %c0_i32, %c0_i32_0 : i32, i32
  }
  func.func @transform_6(%arg0: i32) -> (i32, i32) {
    %c0_i32 = arith.constant 0 : i32
    %c0_i32_0 = arith.constant 0 : i32
    %c0_i32_1 = arith.constant 0 : i32
    return %c0_i32, %c0_i32_0 : i32, i32
  }
  func.func @transform_7(%arg0: i32) -> (i32, i32) {
    %c0_i32 = arith.constant 0 : i32
    %c0_i32_0 = arith.constant 0 : i32
    %c0_i32_1 = arith.constant 0 : i32
    return %c0_i32, %c0_i32_0 : i32, i32
  }
  func.func @transform_8(%arg0: i32) -> (i32, i32) {
    %c0_i32 = arith.constant 0 : i32
    %c0_i32_0 = arith.constant 0 : i32
    %c0_i32_1 = arith.constant 0 : i32
    return %c0_i32, %c0_i32_0 : i32, i32
  }
  func.func @transform_9(%arg0: i32) -> (i32, i32) {
    %c0_i32 = arith.constant 0 : i32
    %c0_i32_0 = arith.constant 0 : i32
    %c0_i32_1 = arith.constant 0 : i32
    return %c0_i32, %c0_i32_0 : i32, i32
  }
  func.func @transform_10(%arg0: i32) -> (i32, i32) {
    %c0_i32 = arith.constant 0 : i32
    %c0_i32_0 = arith.constant 0 : i32
    %c0_i32_1 = arith.constant 0 : i32
    return %c0_i32, %c0_i32_0 : i32, i32
  }
  func.func @transform_11(%arg0: i32) -> (i32, i32, i32) {
    %c0_i32 = arith.constant 0 : i32
    %c0_i32_0 = arith.constant 0 : i32
    %c0_i32_1 = arith.constant 0 : i32
    return %arg0, %c0_i32, %c0_i32_0 : i32, i32, i32
  }
}

</mosaic_0001>

<bundles_post_ra>
// kernel: tpu_custom_call.1
= control target key start
LH: loop header
LB: loop body
LE: loop exit
PB: predicated region body
PF: predicated region fallthrough
CT: control target
= control target key end

     0   :  { %s1060_s0 = inlined_call_operand.vmem [shape: bf16[64,8], index: 0, kind: input, shape index: {}]   ;;  %s1061_s1 = inlined_call_operand.hbm [shape: bf16[8,32], index: 1, kind: input, shape index: {}]   ;;  %s1062_s2 = inlined_call_operand.vmem [shape: f32[1,32], index: 2, kind: input, shape index: {}]   ;;  %s1063_s3 = inlined_call_operand.vmem [shape: bf16[32,32], index: 3, kind: input, shape index: {}]   ;;  %s1064_s4 = inlined_call_operand.vmem [shape: f32[1,32], index: 4, kind: input, shape index: {}]   ;;  %s1065_s5 = inlined_call_operand.vmem [shape: bf16[32,32], index: 5, kind: input, shape index: {}]   ;;  %s1066_s6 = inlined_call_operand.vmem [shape: f32[1,32], index: 6, kind: input, shape index: {}]   ;;  %s1067_s7 = inlined_call_operand.vmem [shape: bf16[32,32], index: 7, kind: input, shape index: {}]   ;;  %s1068_s8 = inlined_call_operand.vmem [shape: f32[1,32], index: 8, kind: input, shape index: {}]   ;;  %s1069_s9 = inlined_call_operand.vmem [shape: f32[1,32], index: 9, kind: input, shape index: {}]   ;;  %s1070_s10 = inlined_call_operand.<no memory space> [shape: f32[1,1], index: 10, kind: input, shape index: {}]   ;;  %s1071_s11 = inlined_call_operand.hbm [shape: f32[1,1,64], index: 11, kind: output, shape index: {}]  }
   0x1   :  { %v16_v0 = vstv %s1070_s10 }
   0x2   :  { %17 = vst [vmem:[#allocation2] sm:$0x1] %v16_v0 }
   0x3   :  { %18 = vsyncpa [#allocation4], 0 }
   0x4   :  { %19 = vsyncpa [#allocation5], 0  ;;  %s895_s19 = smov [#allocation3]   ;;  %s847_s23 = scalar_lea.hbm %s1061_s1, 64 }
   0x5   :  { %s28_s20 = sshll.u32 %s895_s19, 4  ;;  %p848_p0 = scmp.ne.s32.totalorder %s1061_s1, %s847_s23  ;;  %s29_s20 = int_to_ptr.vmem [resolvable:$true] %s28_s20 }
   0x6   :  { %p851_p1 = scmp.lt.u32.totalorder %s847_s23, %s1061_s1 }
   0x8   :  { %p853_p2 = pnand %p851_p1, %p848_p0 }
   0xa   :  { %856 = shalt.err (!%p853_p2)
}
   0xb   :  { %s857_s10 = scalar_lea.vmem %s29_s20, 64  ;;  %p862_p4 = scmp.lt.s32.totalorder %s29_s20, %s29_s20 }
   0xc   :  { %p858_p3 = scmp.ne.s32.totalorder %s29_s20, %s857_s10  ;;  %p863_p5 = scmp.lt.s32.totalorder %s857_s10, %s857_s10 }
   0xe   :  { %p864_p6 = por %p863_p5, %p862_p4 }
  0x10   :  { %p865_p7 = pnand %p864_p6, %p858_p3 }
  0x12   :  { %868 = shalt.err (!%p865_p7)
}
  0x13   :  { %31 = dma.hbm_to_vmem [thread:$0]  %s1061_s1, 64, %s29_s20, [#allocation4]  }
  0x14   :  { %891 = dma.done.wait [#allocation4], 64  }
  0x15   :  { %892 = vsyncadd [#allocation4], 4294967232  ;;  %vm103_vm0 = vcmask 1043456   ;;  %vm90_vm1 = vcmask 64512   ;;  %v62_v1 = vld [vmem:[#allocation3] sm:$0xf] }
  0x16   :  { %828 = vmatprep.subr.msk.bf16.mxu0 %vm103_vm0, %v62_v1  ;;  %v105_v2 = vsel %vm103_vm0, %v62_v1, 0  ;;  %v837_v3 = vld [vmem:[%s1060_s0] sm:$0xff]   ;;  %829 = vmatprep.subr.msk.bf16.mxu1 %vm103_vm0, %v62_v1  ;;  %v838_v4 = vld [vmem:[%s1060_s0 + $0x8] sm:$0xff]   ;;  %v839_v5 = vld [vmem:[%s1060_s0 + $0x10] sm:$0xff]   ;;  %vm215_vm2 = vcmask 261120   ;;  %vm897_vm3 = vmmov 0  }
  0x17   :  { %746 = vmatpush3.bf16.msra.mxu0 %v105_v2  ;;  %827 = vmatpush3.bf16.msra.mxu1 %v105_v2  ;;  %v840_v6 = vld [vmem:[%s1060_s0 + $0x18] sm:$0xff]   ;;  %v841_v7 = vld [vmem:[%s1063_s3] sm:$0xff]   ;;  %v842_v8 = vld [vmem:[%s1063_s3 + $0x8] sm:$0xff]   ;;  %s900_s12 = smov [#allocation6]   ;;  %vm657_vm5 = vcmask 516096  }
  0x18   :  { %747 = vmatprep.mubr.msk.bf16.mxu0 %vm90_vm1, %v837_v3  ;;  %751 = vmatprep.mubr.msk.bf16.mxu1 %vm90_vm1, %v839_v5  ;;  %v674_v9 = vld [vmem:[%s1062_s2] ss:$0 sm:$0xff]  ;;  %v844_v47 = vld [vmem:[%s1065_s5 + $0x8] sm:$0xff]   ;;  %vm1032_vm4 = vmpackc.low %vm215_vm2, %vm215_vm2  ;;  %s665_s13 = sshll.u32 %s900_s12, 4  ;;  %s666_s13 = int_to_ptr.vmem [resolvable:$true] %s665_s13 }
  0x19   :  { %755 = vmatprep.subr.bf16.mxu1 %v841_v7  ;;  %v843_v46 = vld [vmem:[%s1065_s5] sm:$0xff]   ;;  %s869_s14 = scalar_lea.vmem %s666_s13, 16  ;;  %s873_s1 = scalar_lea.vmem %s666_s13, 32 }
  0x1a   :  { %748 = vmatmul.mubr.msk.bf16.vlgmr.msra.gmra.mrb[0].mxu0 %vm90_vm1, %v838_v4  ;;  %752 = vmatmul.mubr.msk.bf16.vlgmr.msra.gmra.mrb[0].mxu1 %vm90_vm1, %v840_v6  ;;  %v845_v48 = vld [vmem:[%s1067_s7] sm:$0xff]   ;;  %p870_p8 = scmp.ne.s32.totalorder %s666_s13, %s869_s14  ;;  %p874_p9 = scmp.lt.s32.totalorder %s666_s13, %s666_s13 }
  0x1b   :  { %756 = vmatpush3.bf16.msra.mxu1 %v841_v7  ;;  %767 = vmatprep.subr.bf16.mxu0 %v843_v46  ;;  %v683_v49 = vld [vmem:[%s1064_s4] ss:$0 sm:$0xff]  ;;  %p875_p10 = scmp.lt.s32.totalorder %s873_s1, %s869_s14 }
  0x1c   :  { %757 = vmatprep.subr.bf16.mxu1 %v842_v8  ;;  %768 = vmatpush3.bf16.msra.mxu0 %v843_v46 }
  0x1d   :  { %769 = vmatprep.subr.bf16.mxu0 %v844_v47  ;;  %p876_p11 = por %p875_p10, %p874_p9 }
  0x1f   :  { %758 = vmatpush3.bf16.msra.mxu1 %v842_v8  ;;  %p877_p12 = pnand %p876_p11, %p870_p8 }
  0x20   :  { %770 = vmatpush3.bf16.msra.mxu0 %v844_v47  ;;  %779 = vmatprep.subr.bf16.mxu1 %v845_v48 }
  0xed   :  { %v749_v10 = vpop.f32.mrb[0].mxu0  ;;  %v753_v13 = vpop.f32.mrb[0].mxu1 }
  0xee   :  { %v150_v11 = vadd.f32 %v749_v10, %v674_v9  ;;  %v141_v12 = vpop.f32.mrb[1].mxu0  ;;  %v166_v16 = vadd.f32 %v753_v13, %v674_v9  ;;  %v157_v17 = vpop.f32.mrb[1].mxu1 }
  0xef   :  { %v142_v14 = vadd.f32 %v674_v9, %v141_v12  ;;  %v750_v15 = vpop.f32.mrb[2].mxu0  ;;  %v158_v21 = vadd.f32 %v674_v9, %v157_v17  ;;  %v754_v22 = vpop.f32.mrb[2].mxu1 }
  0xf0   :  { %v174_v18 = vmul.f32 0.2, %v150_v11  ;;  %v153_v19 = vadd.f32 %v750_v15, %v674_v9  ;;  %v144_v20 = vpop.f32.mrb[3].mxu0  ;;  %v178_v25 = vmul.f32 0.2, %v166_v16  ;;  %v169_v26 = vadd.f32 %v754_v22, %v674_v9  ;;  %v160_v27 = vpop.f32.mrb[3].mxu1 }
  0xf1   :  { %v172_v23 = vmul.f32 0.2, %v142_v14  ;;  %v145_v24 = vadd.f32 %v674_v9, %v144_v20  ;;  %v176_v29 = vmul.f32 0.2, %v158_v21  ;;  %v161_v30 = vadd.f32 %v674_v9, %v160_v27  ;;  %v846_v22 = vld [vmem:[%s1067_s7 + $0x8] sm:$0xff]  }
  0xf2   :  { %v175_v28 = vmul.f32 0.2, %v153_v19  ;;  %v186_v32 = vmax.f32 %v166_v16, %v178_v25  ;;  %v179_v33 = vmul.f32 0.2, %v169_v26  ;;  %v182_v34 = vmax.f32 %v150_v11, %v174_v18 }
  0xf3   :  { %v173_v31 = vmul.f32 0.2, %v145_v24  ;;  %v184_v36 = vmax.f32 %v158_v21, %v176_v29  ;;  %v177_v37 = vmul.f32 0.2, %v161_v30  ;;  %v180_v38 = vmax.f32 %v142_v14, %v172_v23  ;;  %v690_v23 = vld [vmem:[%s1066_s6] ss:$0 sm:$0xff] }
  0xf4   :  { %v183_v35 = vmax.f32 %v153_v19, %v175_v28  ;;  %v187_v40 = vmax.f32 %v169_v26, %v179_v33 }
  0xf5   :  { %v181_v39 = vmax.f32 %v145_v24, %v173_v31  ;;  %v185_v42 = vmax.f32 %v161_v30, %v177_v37 }
  0xf6   :  { %v189_v41 = vpack.c.bf16 %v183_v35, %v182_v34  ;;  %v191_v44 = vpack.c.bf16 %v187_v40, %v186_v32 }
  0xf7   :  { %v188_v43 = vpack.c.bf16 %v181_v39, %v180_v38  ;;  %v190_v45 = vpack.c.bf16 %v185_v42, %v184_v36 }
  0xf9   :  { %759 = vmatprep.mubr.msk.bf16.mxu1 %vm215_vm2, %v188_v43 }
  0xfa   :  { %760 = vmatmul.mubr.msk.bf16.vlgmr.msra.gmra.mrb[4].mxu1 %vm215_vm2, %v189_v41 }
  0xfb   :  { %763 = vmatprep.mubr.msk.bf16.mxu1 %vm215_vm2, %v190_v45  ;;  %780 = vmatpush3.bf16.msra.mxu1 %v845_v48 }
  0xfc   :  { %781 = vmatprep.subr.bf16.mxu1 %v846_v22 }
  0xff   :  { %782 = vmatpush3.bf16.msra.mxu1 %v846_v22 }
 0x102   :  { %764 = vmatmul.mubr.msk.bf16.gmra.mrb[8].mxu1 %vm215_vm2, %v191_v44 }
 0x1cd   :  { %v761_v50 = vpop.f32.mrb[4].mxu1 }
 0x1ce   :  { %v271_v51 = vadd.f32 %v761_v50, %v683_v49  ;;  %v262_v52 = vpop.f32.mrb[5].mxu1 }
 0x1cf   :  { %v263_v53 = vadd.f32 %v683_v49, %v262_v52  ;;  %v762_v54 = vpop.f32.mrb[6].mxu1 }
 0x1d0   :  { %v295_v55 = vmul.f32 0.2, %v271_v51  ;;  %v274_v56 = vadd.f32 %v762_v54, %v683_v49  ;;  %v265_v57 = vpop.f32.mrb[7].mxu1 }
 0x1d1   :  { %v293_v58 = vmul.f32 0.2, %v263_v53  ;;  %v266_v59 = vadd.f32 %v683_v49, %v265_v57 }
 0x1d2   :  { %v296_v60 = vmul.f32 0.2, %v274_v56  ;;  %v303_v62 = vmax.f32 %v271_v51, %v295_v55 }
 0x1d3   :  { %v294_v61 = vmul.f32 0.2, %v266_v59  ;;  %v301_v0 = vmax.f32 %v263_v53, %v293_v58 }
 0x1d4   :  { %v304_v63 = vmax.f32 %v274_v56, %v296_v60  ;;  %v896_v60 = vmov 0.0|0.0  }
 0x1d5   :  { %v302_v1 = vmax.f32 %v266_v59, %v294_v61  ;;  %v765_v2 = vpop.f32.mrb[8].mxu1  ;;  %810 = vmatprep.subr.bf16.mxu0 %v896_v60  ;;  %v898_v61 = vmov 0.0  }
 0x1d6   :  { %v310_v3 = vpack.c.bf16 %v304_v63, %v303_v62  ;;  %v287_v4 = vadd.f32 %v765_v2, %v683_v49  ;;  %v278_v5 = vpop.f32.mrb[9].mxu1  ;;  %v550_v62 = vld [vmem:[#allocation2] sm:$0x1]  ;;  %v899_v63 = vmov 0  }
 0x1d7   :  { %v309_v6 = vpack.c.bf16 %v302_v1, %v301_v0  ;;  %v279_v7 = vadd.f32 %v683_v49, %v278_v5  ;;  %v766_v8 = vpop.f32.mrb[10].mxu1  ;;  %836 = vset.pattern.permute.xlu0 %v899_v63  ;;  %v697_v0 = vld [vmem:[%s1068_s8] ss:$0 sm:$0xff] }
 0x1d8   :  { %v299_v9 = vmul.f32 0.2, %v287_v4  ;;  %v290_v10 = vadd.f32 %v766_v8, %v683_v49  ;;  %v281_v11 = vpop.f32.mrb[11].mxu1  ;;  %553 = vperm.xlu0 %836, %v550_v62  }
 0x1d9   :  { %v297_v12 = vmul.f32 0.2, %v279_v7  ;;  %v282_v13 = vadd.f32 %v683_v49, %v281_v11  ;;  %771 = vmatprep.mubr.msk.bf16.mxu0 %vm215_vm2, %v309_v6 }
 0x1da   :  { %v300_v14 = vmul.f32 0.2, %v290_v10  ;;  %772 = vmatmul.mubr.msk.bf16.vlgmr.msra.gmra.mrb[4].mxu0 %vm215_vm2, %v310_v3  ;;  %v307_v16 = vmax.f32 %v287_v4, %v299_v9 }
 0x1db   :  { %v298_v15 = vmul.f32 0.2, %v282_v13  ;;  %v305_v18 = vmax.f32 %v279_v7, %v297_v12 }
 0x1dc   :  { %v308_v17 = vmax.f32 %v290_v10, %v300_v14 }
 0x1dd   :  { %v306_v19 = vmax.f32 %v282_v13, %v298_v15 }
 0x1de   :  { %v312_v20 = vpack.c.bf16 %v308_v17, %v307_v16 }
 0x1df   :  { %v311_v21 = vpack.c.bf16 %v306_v19, %v305_v18 }
 0x1e1   :  { %775 = vmatprep.mubr.msk.bf16.mxu0 %vm215_vm2, %v311_v21 }
 0x1e2   :  { %776 = vmatmul.mubr.msk.bf16.gmra.mrb[8].mxu0 %vm215_vm2, %v312_v20 }
 0x1e3   :  { %807 = vmatprep.mubr.msk.f32.mxu0 %vm897_vm3, %v898_v61 }
 0x2ad   :  { %v773_v24 = vpop.f32.mrb[4].mxu0 }
 0x2ae   :  { %v391_v25 = vadd.f32 %v773_v24, %v690_v23  ;;  %v382_v26 = vpop.f32.mrb[5].mxu0 }
 0x2af   :  { %v383_v27 = vadd.f32 %v690_v23, %v382_v26  ;;  %v774_v28 = vpop.f32.mrb[6].mxu0 }
 0x2b0   :  { %v415_v29 = vmul.f32 0.2, %v391_v25  ;;  %v394_v30 = vadd.f32 %v774_v28, %v690_v23  ;;  %v385_v31 = vpop.f32.mrb[7].mxu0 }
 0x2b1   :  { %v413_v32 = vmul.f32 0.2, %v383_v27  ;;  %v386_v33 = vadd.f32 %v690_v23, %v385_v31 }
 0x2b2   :  { %v416_v34 = vmul.f32 0.2, %v394_v30  ;;  %v423_v36 = vmax.f32 %v391_v25, %v415_v29 }
 0x2b3   :  { %v414_v35 = vmul.f32 0.2, %v386_v33  ;;  %v421_v38 = vmax.f32 %v383_v27, %v413_v32 }
 0x2b4   :  { %v424_v37 = vmax.f32 %v394_v30, %v416_v34 }
 0x2b5   :  { %v422_v39 = vmax.f32 %v386_v33, %v414_v35  ;;  %v777_v40 = vpop.f32.mrb[8].mxu0 }
 0x2b6   :  { %v430_v41 = vpack.c.bf16 %v424_v37, %v423_v36  ;;  %v407_v42 = vadd.f32 %v777_v40, %v690_v23  ;;  %v398_v43 = vpop.f32.mrb[9].mxu0 }
 0x2b7   :  { %v429_v44 = vpack.c.bf16 %v422_v39, %v421_v38  ;;  %v399_v45 = vadd.f32 %v690_v23, %v398_v43  ;;  %v778_v46 = vpop.f32.mrb[10].mxu0  ;;  %v549_v38 = vld [vmem:[%s1069_s9] sm:$0x1]  ;;  %v556_v39 = vlaneseq }
 0x2b8   :  { %v419_v47 = vmul.f32 0.2, %v407_v42  ;;  %v410_v48 = vadd.f32 %v778_v46, %v690_v23  ;;  %v401_v49 = vpop.f32.mrb[11].mxu0 }
 0x2b9   :  { %v417_v50 = vmul.f32 0.2, %v399_v45  ;;  %v402_v51 = vadd.f32 %v690_v23, %v401_v49  ;;  %783 = vmatprep.mubr.msk.bf16.mxu1 %vm215_vm2, %v429_v44  ;;  %v557_v40 = vshrl.u32 %v556_v39, 7 }
 0x2ba   :  { %v420_v52 = vmul.f32 0.2, %v410_v48  ;;  %784 = vmatmul.mubr.msk.bf16.vlgmr.msra.gmra.mrb[12].mxu1 %vm215_vm2, %v430_v41  ;;  %v427_v54 = vmax.f32 %v407_v42, %v419_v47  ;;  %v554_v42 = vpop.permute.xlu0 %553 }
 0x2bb   :  { %v418_v53 = vmul.f32 0.2, %v402_v51  ;;  %v425_v56 = vmax.f32 %v399_v45, %v417_v50  ;;  %v558_v41 = vsub.s32 0, %v557_v40 }
 0x2bc   :  { %v428_v55 = vmax.f32 %v410_v48, %v420_v52 }
 0x2bd   :  { %v426_v57 = vmax.f32 %v402_v51, %v418_v53  ;;  %v559_v43 = vrot.slane %v554_v42, %v558_v41 }
 0x2be   :  { %v432_v58 = vpack.c.bf16 %v428_v55, %v427_v54 }
 0x2bf   :  { %v431_v59 = vpack.c.bf16 %v426_v57, %v425_v56 }
 0x2c1   :  { %787 = vmatprep.mubr.msk.bf16.mxu1 %vm215_vm2, %v431_v59 }
 0x2c2   :  { %788 = vmatmul.mubr.msk.bf16.gmra.mrb[16].mxu1 %vm215_vm2, %v432_v58 }
 0x38d   :  { %v785_v1 = vpop.f32.mrb[12].mxu1 }
 0x38e   :  { %v511_v2 = vadd.f32 %v785_v1, %v697_v0  ;;  %v502_v3 = vpop.f32.mrb[13].mxu1 }
 0x38f   :  { %v503_v4 = vadd.f32 %v697_v0, %v502_v3  ;;  %v786_v5 = vpop.f32.mrb[14].mxu1 }
 0x390   :  { %v535_v6 = vmul.f32 0.2, %v511_v2  ;;  %v514_v7 = vadd.f32 %v786_v5, %v697_v0  ;;  %v505_v8 = vpop.f32.mrb[15].mxu1 }
 0x391   :  { %v533_v9 = vmul.f32 0.2, %v503_v4  ;;  %v506_v10 = vadd.f32 %v697_v0, %v505_v8 }
 0x392   :  { %v536_v11 = vmul.f32 0.2, %v514_v7  ;;  %v543_v13 = vmax.f32 %v511_v2, %v535_v6 }
 0x393   :  { %v534_v12 = vmul.f32 0.2, %v506_v10  ;;  %v541_v15 = vmax.f32 %v503_v4, %v533_v9 }
 0x394   :  { %v544_v14 = vmax.f32 %v514_v7, %v536_v11 }
 0x395   :  { %v542_v16 = vmax.f32 %v506_v10, %v534_v12  ;;  %v789_v17 = vpop.f32.mrb[16].mxu1 }
 0x396   :  { %v815_v18 = vpack.c.bf16 %v544_v14, %v543_v13  ;;  %v527_v19 = vadd.f32 %v789_v17, %v697_v0  ;;  %v518_v20 = vpop.f32.mrb[17].mxu1 }
 0x397   :  { %v811_v22 = vpack.c.bf16 %v542_v16, %v541_v15  ;;  %v519_v23 = vadd.f32 %v697_v0, %v518_v20  ;;  %v790_v24 = vpop.f32.mrb[18].mxu1 }
 0x398   :  { %v539_v25 = vmul.f32 0.2, %v527_v19  ;;  %v530_v26 = vadd.f32 %v790_v24, %v697_v0  ;;  %v521_v27 = vpop.f32.mrb[19].mxu1 }
 0x399   :  { %v537_v28 = vmul.f32 0.2, %v519_v23  ;;  %v522_v29 = vadd.f32 %v697_v0, %v521_v27  ;;  %813 = vmatpush3.bf16.xpose.msk.msra.mxu0 %vm1032_vm4, %v811_v22 }
 0x39a   :  { %v540_v30 = vmul.f32 0.2, %v530_v26  ;;  %814 = vmatprep.subr.bf16.mxu0 %v896_v60  ;;  %v547_v32 = vmax.f32 %v527_v19, %v539_v25 }
 0x39b   :  { %v538_v31 = vmul.f32 0.2, %v522_v29  ;;  %v545_v34 = vmax.f32 %v519_v23, %v537_v28 }
 0x39c   :  { %v548_v33 = vmax.f32 %v530_v26, %v540_v30 }
 0x39d   :  { %v546_v35 = vmax.f32 %v522_v29, %v538_v31 }
 0x39e   :  { %v823_v36 = vpack.c.bf16 %v548_v33, %v547_v32 }
 0x39f   :  { %v819_v37 = vpack.c.bf16 %v546_v35, %v545_v34 }
 0x3a1   :  { %817 = vmatpush3.bf16.xpose.msk.msra.mxu0 %vm1032_vm4, %v815_v18 }
 0x3a2   :  { %818 = vmatprep.subr.bf16.mxu0 %v896_v60 }
 0x3a9   :  { %821 = vmatpush3.bf16.xpose.msk.msra.mxu0 %vm1032_vm4, %v819_v37 }
 0x3aa   :  { %822 = vmatprep.subr.bf16.mxu0 %v896_v60 }
 0x3b1   :  { %825 = vmatpush3.bf16.xpose.msk.msra.mxu0 %vm1032_vm4, %v823_v36 }
 0x3b8   :  { %808 = vmatmul.mubr.msk.f32.vlgmr.msra.gmra.mrb[12].mxu0 %vm215_vm2, %v549_v38 }
 0x48b   :  { %v653_v44 = vpop.f32.mrb[12].mxu0 }
 0x48c   :  { %v654_v45 = vadd.f32 %v653_v44, %v559_v43  ;;  %v809_v46 = vpop.f32.mrb[13].mxu0 }
 0x48e   :  { %658 = vst.msk [vmem:[#allocation6] sm:$0x1] %vm657_vm5, %v654_v45 }
 0x48f   :  { %880 = shalt.err (!%p877_p12)
}
 0x490   :  { %s881_s16 = scalar_lea.hbm %s1071_s11, 16 }
 0x491   :  { %p882_p13 = scmp.ne.s32.totalorder %s1071_s11, %s881_s16  ;;  %p885_p0 = scmp.lt.u32.totalorder %s881_s16, %s1071_s11 }
 0x493   :  { %p887_p1 = pnand %p885_p0, %p882_p13 }
 0x495   :  { %890 = shalt.err (!%p887_p1)
}
 0x496   :  { %668 = dma.vmem_to_hbm [thread:$0]  %s666_s13, 16, %s1071_s11, [#allocation5]  }
 0x497   :  { %893 = dma.done.wait [#allocation5], 16  }
 0x498   :  { %894 = vsyncadd [#allocation5], 4294967280 }
 0x499   :  { %672 = vsyncpa [#allocation4], 1 }
 0x49a   :  { %673 = vsyncpa [#allocation5], 1 }

</bundles_post_ra>
